<compile_context>
chip_gen: v7x
topology: tpu7x:2x2x1
jax: 0.10.0
libtpu: 0.0.40
codegen_flags: <defaults>
</compile_context>

<pallas_src>
import functools

import jax
import jax.numpy as jnp
from jax.experimental import pallas as pl
from jax.experimental.pallas import tpu as pltpu


def _round_up(v, m):
    return ((v + m - 1) // m) * m


def _ls_ce_kernel(x_ref, tgt_ref, out_ref, *, smoothing: float):
    confidence = 1.0 - smoothing

    logits = x_ref[...].astype(jnp.float32)                 # (TM, C), f32 math
    tm, c = logits.shape

    # Row-wise stable logsumexp.
    m = jnp.max(logits, axis=-1, keepdims=True)                        # (TM, 1)
    sum_exp = jnp.sum(jnp.exp(logits - m), axis=-1, keepdims=True)     # (TM, 1)
    lse = m + jnp.log(sum_exp)                                         # (TM, 1)

    # Fused target-gather + smoothing mean:
    #   loss = conf*(lse - x[tgt]) + sm*(lse - mean(x))
    #        = lse - sum_j x_j * (sm/C + conf*[j == tgt])
    tgt = tgt_ref[...]                                                 # (TM, 1)
    col = jax.lax.broadcasted_iota(jnp.int32, (tm, c), 1)
    w = jnp.where(col == tgt, confidence + smoothing / c, smoothing / c)
    weighted = jnp.sum(logits * w, axis=-1, keepdims=True)             # (TM, 1)

    out_ref[...] = lse - weighted


def _default_vmem_limit_bytes():
    try:
        info = pltpu.get_tpu_info()
        cap = int(getattr(info, "vmem_capacity_bytes", 128 << 20))
    except Exception:
        cap = 128 << 20
    # ~48 MiB on 128 MiB parts (v5e/v6e), ~24 MiB on 64 MiB parts (v7x).
    return (cap * 3) // 8


def _pick_block_rows(n, c, in_itemsize, vmem_limit_bytes):
    # Lane-padded class width determines the real VMEM footprint per row.
    c_pad = _round_up(c, 128)
    # Double-buffered input tile + ~4 full-width f32 temporaries
    # (f32 upcast, exp, iota/select, weighted product) in the body.
    per_row = 2 * c_pad * in_itemsize + 4 * c_pad * 4
    budget = int(vmem_limit_bytes * 0.6)
    br = budget // max(per_row, 1)
    br = max(8, min(br, 1024))
    # Keep at least 2 grid steps where possible (megacore row sharding).
    br = min(br, max(8, _round_up(pl.cdiv(n, 2), 8)))
    return max(8, (br // 8) * 8)


def label_smoothing_cross_entropy(x, target, smoothing: float = 0.1,
                                  block_rows=None, vmem_limit_bytes=None):
    """x: (N, C) logits (any float dtype, read natively); target: (N,) int.
    Returns per-sample label-smoothed CE loss, shape (N,), float32."""
    assert smoothing < 1.0
    n, c = x.shape

    if vmem_limit_bytes is None:
        vmem_limit_bytes = _default_vmem_limit_bytes()
    if block_rows is None:
        block_rows = _pick_block_rows(n, c, jnp.dtype(x.dtype).itemsize,
                                      vmem_limit_bytes)
    assert block_rows % 8 == 0, "block_rows must be a multiple of 8"

    tgt_col = target.astype(jnp.int32).reshape(n, 1)

    kernel = functools.partial(_ls_ce_kernel, smoothing=float(smoothing))

    out = pl.pallas_call(
        kernel,
        out_shape=jax.ShapeDtypeStruct((n, 1), jnp.float32),
        grid_spec=pltpu.PrefetchScalarGridSpec(
            num_scalar_prefetch=0,
            grid=(pl.cdiv(n, block_rows),),
            in_specs=[
                pl.BlockSpec((block_rows, c), lambda i: (i, 0)),
                pl.BlockSpec((block_rows, 1), lambda i: (i, 0)),
            ],
            out_specs=pl.BlockSpec((block_rows, 1), lambda i: (i, 0)),
        ),
        compiler_params=pltpu.CompilerParams(
            dimension_semantics=("parallel",),
            vmem_limit_bytes=int(vmem_limit_bytes)),
    )(x, tgt_col)

    return out.reshape(n)


def _reference(x, target, smoothing=0.1):
    confidence = 1.0 - smoothing
    logprobs = jax.nn.log_softmax(x.astype(jnp.float32), axis=-1)
    nll = -jnp.take_along_axis(logprobs, target[:, None], axis=-1)[:, 0]
    smooth = -jnp.mean(logprobs, axis=-1)
    return confidence * nll + smoothing * smooth


if __name__ == "__main__":
    key = jax.random.PRNGKey(0)
    k1, k2, k3, k4 = jax.random.split(key, 4)

    # Case 1: f32 logits, N divisible by the (explicit) block, C not a
    # multiple of 128 (exercises lane masking of the class reductions).
    N1, C1 = 16, 40
    x1 = jax.random.normal(k1, (N1, C1), dtype=jnp.float32)
    t1 = jax.random.randint(k2, (N1,), 0, C1, dtype=jnp.int32)
    loss1 = label_smoothing_cross_entropy(x1, t1, smoothing=0.1, block_rows=8)
    loss1 = jax.block_until_ready(loss1)
    ref1 = _reference(x1, t1, smoothing=0.1)
    assert loss1.shape == (N1,)
    assert jnp.allclose(loss1, ref1, atol=1e-4, rtol=1e-4), (loss1, ref1)

    # Case 2: bf16 logits read natively, ragged N (not a multiple of the
    # auto-picked block_rows), C not a multiple of 128.
    N2, C2 = 20, 257
    x2 = jax.random.normal(k3, (N2, C2), dtype=jnp.float32).astype(jnp.bfloat16)
    t2 = jax.random.randint(k4, (N2,), 0, C2, dtype=jnp.int32)
    loss2 = label_smoothing_cross_entropy(x2, t2, smoothing=0.1)
    loss2 = jax.block_until_ready(loss2)
    ref2 = _reference(x2, t2, smoothing=0.1)
    assert loss2.shape == (N2,)
    assert jnp.allclose(loss2, ref2, atol=1e-4, rtol=1e-4), (loss2, ref2)

    print("KERNEL_OK")
</pallas_src>

<mosaic_0001>
module attributes {stable_mosaic.version = 11 : i64} {
  func.func @_ls_ce_kernel(%arg0: i32, %arg1: memref<8x40xf32, #tpu.memory_space<vmem>>, %arg2: memref<8x1xi32, #tpu.memory_space<vmem>>, %arg3: memref<8x1xf32, #tpu.memory_space<vmem>>) attributes {dimension_semantics = [#tpu.dimension_semantics<parallel>], iteration_bounds = array<i64: 2>, scalar_prefetch = 0 : i64, scratch_operands = 0 : i64, tpu.core_type = #tpu.core_type<tc>, window_params = [{transform_indices = @transform_0, window_bounds = array<i64: 8, 40>}, {transform_indices = @transform_1, window_bounds = array<i64: 8, 1>}, {transform_indices = @transform_2, window_bounds = array<i64: 8, 1>}]} {
    %c0 = arith.constant 0 : index
    %c0_0 = arith.constant 0 : index
    %0 = vector.load %arg1[%c0, %c0_0] : memref<8x40xf32, #tpu.memory_space<vmem>>, vector<8x40xf32>
    %cst = arith.constant dense<0xFF800000> : vector<8xf32>
    %1 = vector.multi_reduction <maximumf>, %0, %cst [1] : vector<8x40xf32> to vector<8xf32>
    %2 = vector.shape_cast %1 : vector<8xf32> to vector<8x1xf32>
    %3 = vector.broadcast %2 : vector<8x1xf32> to vector<8x40xf32>
    %4 = arith.subf %0, %3 : vector<8x40xf32>
    %5 = math.exp %4 : vector<8x40xf32>
    %cst_1 = arith.constant dense<0.000000e+00> : vector<8xf32>
    %6 = vector.multi_reduction <add>, %5, %cst_1 [1] : vector<8x40xf32> to vector<8xf32>
    %7 = vector.shape_cast %6 : vector<8xf32> to vector<8x1xf32>
    %8 = math.log %7 : vector<8x1xf32>
    %9 = arith.addf %2, %8 : vector<8x1xf32>
    %c0_2 = arith.constant 0 : index
    %c0_3 = arith.constant 0 : index
    %10 = vector.load %arg2[%c0_2, %c0_3] : memref<8x1xi32, #tpu.memory_space<vmem>>, vector<8x1xi32>
    %11 = tpu.iota {dimensions = array<i32: 1>} : vector<8x40xi32>
    %12 = vector.broadcast %10 : vector<8x1xi32> to vector<8x40xi32>
    %13 = arith.cmpi eq, %11, %12 : vector<8x40xi32>
    %cst_4 = arith.constant 0.902499973 : f32
    %cst_5 = arith.constant 2.500000e-03 : f32
    %14 = vector.broadcast %cst_4 : f32 to vector<8x40xf32>
    %15 = vector.broadcast %cst_5 : f32 to vector<8x40xf32>
    %16 = arith.select %13, %14, %15 : vector<8x40xi1>, vector<8x40xf32>
    %17 = arith.mulf %0, %16 : vector<8x40xf32>
    %cst_6 = arith.constant dense<0.000000e+00> : vector<8xf32>
    %18 = vector.multi_reduction <add>, %17, %cst_6 [1] : vector<8x40xf32> to vector<8xf32>
    %19 = vector.shape_cast %18 : vector<8xf32> to vector<8x1xf32>
    %20 = arith.subf %9, %19 : vector<8x1xf32>
    %c0_7 = arith.constant 0 : index
    %c0_8 = arith.constant 0 : index
    %21 = vector.load %arg3[%c0_7, %c0_8] : memref<8x1xf32, #tpu.memory_space<vmem>>, vector<8x1xf32>
    tpu.vector_store %arg3[%c0_7, %c0_8], %20 {strides = array<i32>} : memref<8x1xf32, #tpu.memory_space<vmem>>, vector<8x1xf32>,
    return
  }
  func.func @transform_0(%arg0: i32) -> (i32, i32) {
    %c0_i32 = arith.constant 0 : i32
    %c0_i32_0 = arith.constant 0 : i32
    return %arg0, %c0_i32 : i32, i32
  }
  func.func @transform_1(%arg0: i32) -> (i32, i32) {
    %c0_i32 = arith.constant 0 : i32
    %c0_i32_0 = arith.constant 0 : i32
    return %arg0, %c0_i32 : i32, i32
  }
  func.func @transform_2(%arg0: i32) -> (i32, i32) {
    %c0_i32 = arith.constant 0 : i32
    %c0_i32_0 = arith.constant 0 : i32
    return %arg0, %c0_i32 : i32, i32
  }
}

</mosaic_0001>

<bundles_post_ra>
// kernel: tpu_custom_call.1
= control target key start
LH: loop header
LB: loop body
LE: loop exit
PB: predicated region body
PF: predicated region fallthrough
CT: control target
= control target key end

     0   :  { %s300_s9 = smov 0   ;;  %s328_s0 = inlined_call_operand.vmem [shape: f32[16,40], index: 0, kind: input, shape index: {}]   ;;  %s329_s1 = inlined_call_operand.vmem [shape: s32[16,1], index: 1, kind: input, shape index: {}]   ;;  %s330_s2 = inlined_call_operand.vmem [shape: f32[16,1], index: 2, kind: output, shape index: {}]  }
   0x1 LB: > { %s250_s10 = sadd.s32 4294967295, %s281_s9   ;;  %p254_p0 = scmp.ge.s32.totalorder %s281_s9, 1  ;;  %s281_s9 = sphi %s300_s9, %s12_s9  }
   0x2   : > { %p120_p1 = scmp.lt.s32.totalorder %s281_s9, 3 }
   0x4   : > { %p121_p2 = pnand %p254_p0, %p120_p1 }
   0x5   : > { %p144_p3 = scmp.lt.s32.totalorder (!%p121_p2), %s250_s10, 1  ;;  %v283_v0 = vmov (!%p121_p2), 0   ;;  %vm157_vm0 = vcmask (!%p121_p2), 326656   ;;  %v171_v6 = vlaneseq (!%p121_p2)  ;;  %v284_v10 = vmov (!%p121_p2), 0.0025  }
   0x6   : > { %124 = sbr.rel (%p121_p2) target bundleno = 336 (0x150), region = 28  ;;  %270 = vset.pattern.permute.xlu0 (!%p121_p2), %v283_v0  ;;  %vm183_vm2 = vcmask (!%p121_p2), 7168  }
   0x7   : > { %v172_v8 = vand.u32 (!%p121_p2), 127, %v171_v6 }
   0xd   : > { %s332_s10 = smov (!%p144_p3, %s250_s10), 1 }
   0xe   : > { %s308_s11 = sshll.u32 %s332_s10, 3 }
   0xf   : > { %s147_s14 = scalar_lea.vmem %s328_s0, %s308_s11  ;;  %s151_s17 = scalar_lea.vmem %s329_s1, %s308_s11 }
  0x10   : > { %v156_v1 = vld [vmem:[%s147_s14] sm:$0xff]  ;;  %s155_s20 = scalar_lea.vmem %s330_s2, %s308_s11 }
  0x11   : > { %v158_v2 = vsel %vm157_vm0, %v156_v1, -inf  ;;  %v170_v3 = vld [vmem:[%s151_s17] sm:$0xff] }
  0x12   : > { %159 = vmax.xlane.f32.xlu0 %v158_v2 }
  0x28   : > { %174 = vperm.xlu0 %270, %v170_v3  }
  0x9f   : > { %v160_v4 = vpop.xlane.xlu0 %159 }
  0xa0   : > { %v161_v5 = vsub.f32 %v156_v1, %v160_v4 }
  0xa2   : > { %v162_v7 = vmul.f32 1.442695, %v161_v5 }
  0xa4   : > { %271 = vpow2.f32 %v162_v7 }
  0xa7   : > { %v175_v9 = vpop.permute.xlu0 %174 }
  0xa8   : > { %vm176_vm1 = vcmp.eq.s32.totalorder %v172_v8, %v175_v9 }
  0xa9   : > { %v177_v11 = vsel %vm176_vm1, 0.9025, %v284_v10 }
  0xaa   : > { %v178_v12 = vmul.f32 %v177_v11, %v156_v1 }
  0xac   : > { %v179_v15 = vsel %vm157_vm0, %v178_v12, 0.0 }
  0xae   : > { %v272_v13 = vpop.eup %271 }
  0xaf   : > { %v164_v14 = vsel %vm157_vm0, %v272_v13, 0.0 }
  0xb0   : > { %165 = vadd.xlane.f32.xlu1 %v164_v14 }
  0xb4   : > { %180 = vadd.xlane.f32.xlu1 %v179_v15 }
 0x13d   : > { %v166_v16 = vpop.xlane.xlu1 %165 }
 0x13e   : > { %273 = vlog2.f32 %v166_v16 }
 0x141   : > { %v181_v19 = vpop.xlane.xlu1 %180 }
 0x148   : > { %v274_v17 = vpop.eup %273 }
 0x149   : > { %v168_v18 = vmul.f32 0.6931472, %v274_v17 }
 0x14b   : > { %v169_v20 = vadd.f32 %v168_v18, %v160_v4 }
 0x14d   : > { %v182_v21 = vsub.f32 %v169_v20, %v181_v19 }
 0x14f   : > { %184 = vst.msk [vmem:[%s155_s20] sm:$0xff] %vm183_vm2, %v182_v21 }
 0x150 PF: > { %s12_s9 = sadd.s32 1, %s281_s9  }
 0x151   : > { %p9_p4 = scmp.ge.s32.totalorder %s12_s9, 4  }
 0x153   :  { %11 = sbr.rel (!%p9_p4) target bundleno = 1 (0x1), region = 61 }

</bundles_post_ra>
